<compile_context>
chip_gen: v7x
topology: tpu7x:2x2x1
jax: 0.10.0
libtpu: 0.0.40
codegen_flags: <defaults>
</compile_context>

<pallas_src>
import jax
import jax.numpy as jnp
from jax import lax
from jax.experimental import pallas as pl
from jax.experimental.pallas import tpu as pltpu

LANES = 128
NUM_PARTS = 2  # leading "parallel" grid axis (both TCs on v7x; no-op on v5e/v6e)


def _round_up(x, m):
    return -(-x // m) * m


def _make_kernel(th, total, tiles_per_part, tile_rows, needs_mask):
    """Builds the kernel with th/total/tiling folded in as trace-time constants."""

    def kernel(pred_ref, gt_ref, out_ref, acc_pos, acc_neg, acc_cnt):
        t = pl.program_id(1)

        @pl.when(t == 0)
        def _():
            acc_pos[...] = jnp.zeros_like(acc_pos)
            acc_neg[...] = jnp.zeros_like(acc_neg)
            acc_cnt[...] = jnp.zeros_like(acc_cnt)

        p = pred_ref[...].astype(jnp.float32)
        g = gt_ref[...].astype(jnp.float32)

        pos = jnp.where(g >= th, 1.0, 0.0)          # gt.ge(th)
        if needs_mask:
            c = pl.program_id(0)
            base = (c * tiles_per_part + t) * (tile_rows * LANES)
            row_i = lax.broadcasted_iota(jnp.int32, (tile_rows, LANES), 0)
            lane_i = lax.broadcasted_iota(jnp.int32, (tile_rows, LANES), 1)
            mask = ((base + row_i * LANES + lane_i) < total).astype(jnp.float32)
            pos = pos * mask
            neg = mask - pos                         # gt.lt(th), padding excluded
        else:
            neg = 1.0 - pos                          # gt.lt(th)

        # Single log per element: pos/neg sets are disjoint.
        x = jnp.where(g >= th, p, 1.0 - p)
        logx = jnp.log(x)

        one_m_p = 1.0 - p
        one_m_g = 1.0 - g
        neg_w = one_m_g * one_m_g
        neg_w = neg_w * neg_w                        # (1 - gt)^4

        acc_pos[...] += logx * (one_m_p * one_m_p) * pos
        acc_neg[...] += logx * (p * p) * neg_w * neg
        acc_cnt[...] += pos

        @pl.when(t == pl.num_programs(1) - 1)
        def _():
            s_pos = jnp.sum(acc_pos[...])
            s_neg = jnp.sum(acc_neg[...])
            s_cnt = jnp.sum(acc_cnt[...])
            row = lax.broadcasted_iota(jnp.int32, (8, LANES), 0)
            lane = lax.broadcasted_iota(jnp.int32, (8, LANES), 1)
            vals = jnp.where(
                (row == 0) & (lane == 0), s_pos,
                jnp.where(
                    (row == 0) & (lane == 1), s_neg,
                    jnp.where((row == 0) & (lane == 2), s_cnt, 0.0)))
            out_ref[...] = vals[None]

    return kernel


def focal_loss(pred, gt, th=1.0, tile_rows=1024):
    """Equivalent of FocalLoss().forward(pred, gt, th). Returns a scalar f32."""
    assert pred.shape == gt.shape
    total = int(pred.size)

    rows_raw = pl.cdiv(total, LANES)
    # Shrink tile for small inputs; rows must be a multiple of NUM_PARTS*tile_rows.
    tile_rows = max(8, min(int(tile_rows),
                           _round_up(pl.cdiv(rows_raw, NUM_PARTS), 8)))
    rows = _round_up(rows_raw, NUM_PARTS * tile_rows)
    tiles_per_part = rows // (NUM_PARTS * tile_rows)
    padded_total = rows * LANES
    needs_mask = padded_total != total

    # Stream in native dtype (bf16 halves HBM bytes); cast to f32 in-kernel.
    flat_pred = pred.reshape(-1)
    flat_gt = gt.reshape(-1)
    if needs_mask:
        pad = padded_total - total
        # 0.5 keeps log() finite on padding; padding is masked out in-kernel.
        flat_pred = jnp.pad(flat_pred, (0, pad), constant_values=0.5)
        flat_gt = jnp.pad(flat_gt, (0, pad), constant_values=0.5)
    pred2d = flat_pred.reshape(rows, LANES)
    gt2d = flat_gt.reshape(rows, LANES)

    kernel = _make_kernel(float(th), total, tiles_per_part, tile_rows, needs_mask)

    out = pl.pallas_call(
        kernel,
        out_shape=jax.ShapeDtypeStruct((NUM_PARTS, 8, LANES), jnp.float32),
        grid=(NUM_PARTS, tiles_per_part),
        in_specs=[
            pl.BlockSpec((tile_rows, LANES),
                         lambda c, t: (c * tiles_per_part + t, 0)),
            pl.BlockSpec((tile_rows, LANES),
                         lambda c, t: (c * tiles_per_part + t, 0)),
        ],
        out_specs=pl.BlockSpec((1, 8, LANES), lambda c, t: (c, 0, 0)),
        scratch_shapes=[
            pltpu.VMEM((tile_rows, LANES), jnp.float32),
            pltpu.VMEM((tile_rows, LANES), jnp.float32),
            pltpu.VMEM((tile_rows, LANES), jnp.float32),
        ],
        compiler_params=pltpu.CompilerParams(
            dimension_semantics=("parallel", "arbitrary")),
    )(pred2d, gt2d)

    pos_loss = jnp.sum(out[:, 0, 0])
    neg_loss = jnp.sum(out[:, 0, 1])
    num_pos = jnp.sum(out[:, 0, 2])
    # loss = -neg_loss            if num_pos == 0
    #        -(pos+neg)/num_pos   otherwise
    return jnp.where(num_pos == 0.0,
                     -neg_loss,
                     -(pos_loss + neg_loss) / jnp.maximum(num_pos, 1.0))


def _focal_loss_ref(pred, gt, th=1.0):
    pred = pred.astype(jnp.float32)
    gt = gt.astype(jnp.float32)
    pos = (gt >= th).astype(jnp.float32)
    neg = (gt < th).astype(jnp.float32)
    nw = jnp.power(1.0 - gt, 4)
    pl_ = jnp.sum(jnp.log(pred) * jnp.square(1.0 - pred) * pos)
    nl_ = jnp.sum(jnp.log(1.0 - pred) * jnp.square(pred) * nw * neg)
    np_ = jnp.sum(pos)
    return jnp.where(np_ == 0.0, -nl_, -(pl_ + nl_) / jnp.maximum(np_, 1.0))


def _make_inputs(key, shape):
    k1, k2, k3 = jax.random.split(key, 3)
    pred = jax.nn.sigmoid(jax.random.normal(k1, shape, jnp.float32))
    gt = jax.random.uniform(k2, shape, jnp.float32, 0.0, 0.999)
    peaks = jax.random.bernoulli(k3, 0.02, shape)
    gt = jnp.where(peaks, 1.0, gt)
    return pred, gt


if __name__ == "__main__":
    key = jax.random.PRNGKey(0)
    k_a, k_b, k_c = jax.random.split(key, 3)

    # 1) Main case: NCHW (2, 4, 16, 16), lane-exact (no padding / no mask).
    pred, gt = _make_inputs(k_a, (2, 4, 16, 16))
    loss = jax.block_until_ready(focal_loss(pred, gt, th=1.0))
    ref = _focal_loss_ref(pred, gt, th=1.0)
    assert jnp.allclose(loss, ref, rtol=1e-4, atol=1e-4), (loss, ref)

    # 2) Ragged case: exercises in-kernel tail masking.
    pred2, gt2 = _make_inputs(k_b, (2, 3, 7, 5))
    loss2 = jax.block_until_ready(focal_loss(pred2, gt2, th=1.0))
    ref2 = _focal_loss_ref(pred2, gt2, th=1.0)
    assert jnp.allclose(loss2, ref2, rtol=1e-4, atol=1e-4), (loss2, ref2)

    # 3) Multi-tile reduction case (several grid steps per core).
    pred3, gt3 = _make_inputs(k_c, (2, 4, 64, 128))
    loss3 = jax.block_until_ready(focal_loss(pred3, gt3, th=1.0, tile_rows=64))
    ref3 = _focal_loss_ref(pred3, gt3, th=1.0)
    assert jnp.allclose(loss3, ref3, rtol=1e-4, atol=1e-4), (loss3, ref3)

    # 4) bf16 streaming path: stream bf16, cast in-kernel; compare to f32 ref
    #    computed on the same bf16-quantized values.
    pred4 = pred.astype(jnp.bfloat16)
    gt4 = gt.astype(jnp.bfloat16)
    loss4 = jax.block_until_ready(focal_loss(pred4, gt4, th=1.0))
    ref4 = _focal_loss_ref(pred4, gt4, th=1.0)
    assert jnp.allclose(loss4, ref4, rtol=1e-4, atol=1e-4), (loss4, ref4)

    print("KERNEL_OK")
</pallas_src>

<mosaic_0001>
module attributes {stable_mosaic.version = 11 : i64} {
  func.func @kernel(%arg0: i32, %arg1: i32, %arg2: memref<8x128xf32, #tpu.memory_space<vmem>>, %arg3: memref<8x128xf32, #tpu.memory_space<vmem>>, %arg4: memref<1x8x128xf32, #tpu.memory_space<vmem>>, %arg5: memref<8x128xf32, #tpu.memory_space<vmem>>, %arg6: memref<8x128xf32, #tpu.memory_space<vmem>>, %arg7: memref<8x128xf32, #tpu.memory_space<vmem>>) attributes {dimension_semantics = [#tpu.dimension_semantics<parallel>, #tpu.dimension_semantics<arbitrary>], iteration_bounds = array<i64: 2, 1>, scalar_prefetch = 0 : i64, scratch_operands = 3 : i64, tpu.core_type = #tpu.core_type<tc>, window_params = [{transform_indices = @transform_0, window_bounds = array<i64: 8, 128>}, {transform_indices = @transform_1, window_bounds = array<i64: 8, 128>}, {transform_indices = @transform_2, window_bounds = array<i64: 1, 8, 128>}]} {
    %c0_i32 = arith.constant 0 : i32
    %0 = arith.cmpi eq, %arg1, %c0_i32 : i32
    %1 = arith.extui %0 : i1 to i32
    %c0_i32_0 = arith.constant 0 : i32
    %2 = arith.cmpi ne, %1, %c0_i32_0 : i32
    scf.if %2 {
      %cst_25 = arith.constant 0.000000e+00 : f32
      %43 = vector.broadcast %cst_25 : f32 to vector<8x128xf32>
      %c0_26 = arith.constant 0 : index
      %c0_27 = arith.constant 0 : index
      %44 = vector.load %arg5[%c0_26, %c0_27] : memref<8x128xf32, #tpu.memory_space<vmem>>, vector<8x128xf32>
      tpu.vector_store %arg5[%c0_26, %c0_27], %43 {strides = array<i32>} : memref<8x128xf32, #tpu.memory_space<vmem>>, vector<8x128xf32>,
      %cst_28 = arith.constant 0.000000e+00 : f32
      %45 = vector.broadcast %cst_28 : f32 to vector<8x128xf32>
      %c0_29 = arith.constant 0 : index
      %c0_30 = arith.constant 0 : index
      %46 = vector.load %arg6[%c0_29, %c0_30] : memref<8x128xf32, #tpu.memory_space<vmem>>, vector<8x128xf32>
      tpu.vector_store %arg6[%c0_29, %c0_30], %45 {strides = array<i32>} : memref<8x128xf32, #tpu.memory_space<vmem>>, vector<8x128xf32>,
      %cst_31 = arith.constant 0.000000e+00 : f32
      %47 = vector.broadcast %cst_31 : f32 to vector<8x128xf32>
      %c0_32 = arith.constant 0 : index
      %c0_33 = arith.constant 0 : index
      %48 = vector.load %arg7[%c0_32, %c0_33] : memref<8x128xf32, #tpu.memory_space<vmem>>, vector<8x128xf32>
      tpu.vector_store %arg7[%c0_32, %c0_33], %47 {strides = array<i32>} : memref<8x128xf32, #tpu.memory_space<vmem>>, vector<8x128xf32>,
    } else {
    }
    %c0 = arith.constant 0 : index
    %c0_1 = arith.constant 0 : index
    %3 = vector.load %arg2[%c0, %c0_1] : memref<8x128xf32, #tpu.memory_space<vmem>>, vector<8x128xf32>
    %c0_2 = arith.constant 0 : index
    %c0_3 = arith.constant 0 : index
    %4 = vector.load %arg3[%c0_2, %c0_3] : memref<8x128xf32, #tpu.memory_space<vmem>>, vector<8x128xf32>
    %cst = arith.constant 1.000000e+00 : f32
    %5 = vector.broadcast %cst : f32 to vector<8x128xf32>
    %6 = arith.cmpf oge, %4, %5 : vector<8x128xf32>
    %cst_4 = arith.constant 1.000000e+00 : f32
    %cst_5 = arith.constant 0.000000e+00 : f32
    %7 = vector.broadcast %cst_4 : f32 to vector<8x128xf32>
    %8 = vector.broadcast %cst_5 : f32 to vector<8x128xf32>
    %9 = arith.select %6, %7, %8 : vector<8x128xi1>, vector<8x128xf32>
    %cst_6 = arith.constant 1.000000e+00 : f32
    %10 = vector.broadcast %cst_6 : f32 to vector<8x128xf32>
    %11 = arith.subf %10, %9 : vector<8x128xf32>
    %cst_7 = arith.constant 1.000000e+00 : f32
    %12 = vector.broadcast %cst_7 : f32 to vector<8x128xf32>
    %13 = arith.cmpf oge, %4, %12 : vector<8x128xf32>
    %cst_8 = arith.constant 1.000000e+00 : f32
    %14 = vector.broadcast %cst_8 : f32 to vector<8x128xf32>
    %15 = arith.subf %14, %3 : vector<8x128xf32>
    %16 = arith.select %13, %3, %15 : vector<8x128xi1>, vector<8x128xf32>
    %17 = math.log %16 : vector<8x128xf32>
    %cst_9 = arith.constant 1.000000e+00 : f32
    %18 = vector.broadcast %cst_9 : f32 to vector<8x128xf32>
    %19 = arith.subf %18, %3 : vector<8x128xf32>
    %cst_10 = arith.constant 1.000000e+00 : f32
    %20 = vector.broadcast %cst_10 : f32 to vector<8x128xf32>
    %21 = arith.subf %20, %4 : vector<8x128xf32>
    %22 = arith.mulf %21, %21 : vector<8x128xf32>
    %23 = arith.mulf %22, %22 : vector<8x128xf32>
    %c0_11 = arith.constant 0 : index
    %c0_12 = arith.constant 0 : index
    %24 = vector.load %arg5[%c0_11, %c0_12] : memref<8x128xf32, #tpu.memory_space<vmem>>, vector<8x128xf32>
    %25 = arith.mulf %19, %19 : vector<8x128xf32>
    %26 = arith.mulf %17, %25 : vector<8x128xf32>
    %27 = arith.mulf %26, %9 : vector<8x128xf32>
    %28 = arith.addf %24, %27 : vector<8x128xf32>
    %c0_13 = arith.constant 0 : index
    %c0_14 = arith.constant 0 : index
    %29 = vector.load %arg5[%c0_13, %c0_14] : memref<8x128xf32, #tpu.memory_space<vmem>>, vector<8x128xf32>
    tpu.vector_store %arg5[%c0_13, %c0_14], %28 {strides = array<i32>} : memref<8x128xf32, #tpu.memory_space<vmem>>, vector<8x128xf32>,
    %c0_15 = arith.constant 0 : index
    %c0_16 = arith.constant 0 : index
    %30 = vector.load %arg6[%c0_15, %c0_16] : memref<8x128xf32, #tpu.memory_space<vmem>>, vector<8x128xf32>
    %31 = arith.mulf %3, %3 : vector<8x128xf32>
    %32 = arith.mulf %17, %31 : vector<8x128xf32>
    %33 = arith.mulf %32, %23 : vector<8x128xf32>
    %34 = arith.mulf %33, %11 : vector<8x128xf32>
    %35 = arith.addf %30, %34 : vector<8x128xf32>
    %c0_17 = arith.constant 0 : index
    %c0_18 = arith.constant 0 : index
    %36 = vector.load %arg6[%c0_17, %c0_18] : memref<8x128xf32, #tpu.memory_space<vmem>>, vector<8x128xf32>
    tpu.vector_store %arg6[%c0_17, %c0_18], %35 {strides = array<i32>} : memref<8x128xf32, #tpu.memory_space<vmem>>, vector<8x128xf32>,
    %c0_19 = arith.constant 0 : index
    %c0_20 = arith.constant 0 : index
    %37 = vector.load %arg7[%c0_19, %c0_20] : memref<8x128xf32, #tpu.memory_space<vmem>>, vector<8x128xf32>
    %38 = arith.addf %37, %9 : vector<8x128xf32>
    %c0_21 = arith.constant 0 : index
    %c0_22 = arith.constant 0 : index
    %39 = vector.load %arg7[%c0_21, %c0_22] : memref<8x128xf32, #tpu.memory_space<vmem>>, vector<8x128xf32>
    tpu.vector_store %arg7[%c0_21, %c0_22], %38 {strides = array<i32>} : memref<8x128xf32, #tpu.memory_space<vmem>>, vector<8x128xf32>,
    %c0_i32_23 = arith.constant 0 : i32
    %40 = arith.cmpi eq, %arg1, %c0_i32_23 : i32
    %41 = arith.extui %40 : i1 to i32
    %c0_i32_24 = arith.constant 0 : i32
    %42 = arith.cmpi ne, %41, %c0_i32_24 : i32
    scf.if %42 {
      %c0_25 = arith.constant 0 : index
      %c0_26 = arith.constant 0 : index
      %43 = vector.load %arg5[%c0_25, %c0_26] : memref<8x128xf32, #tpu.memory_space<vmem>>, vector<8x128xf32>
      %44 = vector.shape_cast %43 : vector<8x128xf32> to vector<1x8x128xf32>
      %cst_27 = arith.constant dense<0.000000e+00> : vector<1xf32>
      %45 = vector.multi_reduction <add>, %44, %cst_27 [1, 2] : vector<1x8x128xf32> to vector<1xf32>
      %46 = vector.shape_cast %45 : vector<1xf32> to vector<1x1x1xf32>
      %47 = vector.extract %46[0, 0, 0] : f32 from vector<1x1x1xf32>
      %c0_28 = arith.constant 0 : index
      %c0_29 = arith.constant 0 : index
      %48 = vector.load %arg6[%c0_28, %c0_29] : memref<8x128xf32, #tpu.memory_space<vmem>>, vector<8x128xf32>
      %49 = vector.shape_cast %48 : vector<8x128xf32> to vector<1x8x128xf32>
      %cst_30 = arith.constant dense<0.000000e+00> : vector<1xf32>
      %50 = vector.multi_reduction <add>, %49, %cst_30 [1, 2] : vector<1x8x128xf32> to vector<1xf32>
      %51 = vector.shape_cast %50 : vector<1xf32> to vector<1x1x1xf32>
      %52 = vector.extract %51[0, 0, 0] : f32 from vector<1x1x1xf32>
      %c0_31 = arith.constant 0 : index
      %c0_32 = arith.constant 0 : index
      %53 = vector.load %arg7[%c0_31, %c0_32] : memref<8x128xf32, #tpu.memory_space<vmem>>, vector<8x128xf32>
      %54 = vector.shape_cast %53 : vector<8x128xf32> to vector<1x8x128xf32>
      %cst_33 = arith.constant dense<0.000000e+00> : vector<1xf32>
      %55 = vector.multi_reduction <add>, %54, %cst_33 [1, 2] : vector<1x8x128xf32> to vector<1xf32>
      %56 = vector.shape_cast %55 : vector<1xf32> to vector<1x1x1xf32>
      %57 = vector.extract %56[0, 0, 0] : f32 from vector<1x1x1xf32>
      %58 = tpu.iota {dimensions = array<i32: 0>} : vector<8x128xi32>
      %59 = tpu.iota {dimensions = array<i32: 1>} : vector<8x128xi32>
      %c0_i32_34 = arith.constant 0 : i32
      %60 = vector.broadcast %c0_i32_34 : i32 to vector<8x128xi32>
      %61 = arith.cmpi eq, %58, %60 : vector<8x128xi32>
      %c0_i32_35 = arith.constant 0 : i32
      %62 = vector.broadcast %c0_i32_35 : i32 to vector<8x128xi32>
      %63 = arith.cmpi eq, %59, %62 : vector<8x128xi32>
      %64 = arith.andi %61, %63 : vector<8x128xi1>
      %c0_i32_36 = arith.constant 0 : i32
      %65 = vector.broadcast %c0_i32_36 : i32 to vector<8x128xi32>
      %66 = arith.cmpi eq, %58, %65 : vector<8x128xi32>
      %c1_i32 = arith.constant 1 : i32
      %67 = vector.broadcast %c1_i32 : i32 to vector<8x128xi32>
      %68 = arith.cmpi eq, %59, %67 : vector<8x128xi32>
      %69 = arith.andi %66, %68 : vector<8x128xi1>
      %c0_i32_37 = arith.constant 0 : i32
      %70 = vector.broadcast %c0_i32_37 : i32 to vector<8x128xi32>
      %71 = arith.cmpi eq, %58, %70 : vector<8x128xi32>
      %c2_i32 = arith.constant 2 : i32
      %72 = vector.broadcast %c2_i32 : i32 to vector<8x128xi32>
      %73 = arith.cmpi eq, %59, %72 : vector<8x128xi32>
      %74 = arith.andi %71, %73 : vector<8x128xi1>
      %cst_38 = arith.constant 0.000000e+00 : f32
      %75 = vector.broadcast %57 : f32 to vector<8x128xf32>
      %76 = vector.broadcast %cst_38 : f32 to vector<8x128xf32>
      %77 = arith.select %74, %75, %76 : vector<8x128xi1>, vector<8x128xf32>
      %78 = vector.broadcast %52 : f32 to vector<8x128xf32>
      %79 = arith.select %69, %78, %77 : vector<8x128xi1>, vector<8x128xf32>
      %80 = vector.broadcast %47 : f32 to vector<8x128xf32>
      %81 = arith.select %64, %80, %79 : vector<8x128xi1>, vector<8x128xf32>
      %82 = vector.shape_cast %81 : vector<8x128xf32> to vector<1x8x128xf32>
      %c0_39 = arith.constant 0 : index
      %c0_40 = arith.constant 0 : index
      %c0_41 = arith.constant 0 : index
      %83 = vector.load %arg4[%c0_39, %c0_40, %c0_41] : memref<1x8x128xf32, #tpu.memory_space<vmem>>, vector<1x8x128xf32>
      tpu.vector_store %arg4[%c0_39, %c0_40, %c0_41], %82 {strides = array<i32>} : memref<1x8x128xf32, #tpu.memory_space<vmem>>, vector<1x8x128xf32>,
    } else {
    }
    return
  }
  func.func @transform_0(%arg0: i32, %arg1: i32) -> (i32, i32) {
    %c1_i32 = arith.constant 1 : i32
    %0 = arith.muli %arg0, %c1_i32 : i32
    %1 = arith.addi %0, %arg1 : i32
    %c0_i32 = arith.constant 0 : i32
    %c0_i32_0 = arith.constant 0 : i32
    return %1, %c0_i32 : i32, i32
  }
  func.func @transform_1(%arg0: i32, %arg1: i32) -> (i32, i32) {
    %c1_i32 = arith.constant 1 : i32
    %0 = arith.muli %arg0, %c1_i32 : i32
    %1 = arith.addi %0, %arg1 : i32
    %c0_i32 = arith.constant 0 : i32
    %c0_i32_0 = arith.constant 0 : i32
    return %1, %c0_i32 : i32, i32
  }
  func.func @transform_2(%arg0: i32, %arg1: i32) -> (i32, i32, i32) {
    %c0_i32 = arith.constant 0 : i32
    %c0_i32_0 = arith.constant 0 : i32
    %c0_i32_1 = arith.constant 0 : i32
    return %arg0, %c0_i32, %c0_i32_0 : i32, i32, i32
  }
}

</mosaic_0001>

<bundles_post_ra>
// kernel: tpu_custom_call.1
= control target key start
LH: loop header
LB: loop body
LE: loop exit
PB: predicated region body
PF: predicated region fallthrough
CT: control target
= control target key end

     0   :  { %7 = vsyncpa [#allocation6], 0  ;;  %s903_s0 = inlined_call_operand.hbm [shape: f32[16,128], index: 0, kind: input, shape index: {}]   ;;  %s904_s1 = inlined_call_operand.hbm [shape: f32[16,128], index: 1, kind: input, shape index: {}]   ;;  %s905_s2 = inlined_call_operand.hbm [shape: f32[2,8,128], index: 2, kind: output, shape index: {}]  }
   0x1   :  { %9 = vsyncpa [#allocation6 + $0x1], 0 }
   0x2   :  { %10 = vsyncpa [#allocation9], 0 }
   0x3   :  { %12 = vsyncpa [#allocation9 + $0x1], 0 }
   0x4   :  { %13 = vsyncpa [#allocation7], 0 }
   0x5   :  { %15 = vsyncpa [#allocation7 + $0x1], 0  ;;  %s678_s9 = smov 0   ;;  %s680_s10 = smov 0  }
   0x6   :  { %s682_s11 = smov 0   ;;  %s684_s12 = smov 0  }
   0x7   :  { %s686_s13 = smov 0   ;;  %s688_s14 = smov 0  }
   0x8 LB: > { %s419_s15 = sadd.s32 4294967295, %s657_s14   ;;  %s420_s16 = sadd.s32 4294967294, %s657_s14   ;;  %s657_s14 = sphi %s688_s14, %s21_s14   ;;  %s653_s13 = sphi %s686_s13, %s925_s13   ;;  %s649_s12 = sphi %s684_s12, %s924_s12   ;;  %s645_s11 = sphi %s682_s11, %s923_s11   ;;  %s641_s10 = sphi %s680_s10, %s922_s10   ;;  %s637_s9 = sphi %s678_s9, %s921_s9  }
   0x9   : > { %s33_s17 = sadd.s32 1, %s653_s13  ;;  %s42_s18 = sadd.s32 1, %s645_s11 }
   0xa   : > { %p35_p0 = scmp.ge.s32.totalorder %s33_s17, 2  ;;  %p49_p1 = scmp.ne.s32.totalorder %s645_s11, %s641_s10 }
   0xb   : > { %p50_p2 = scmp.eq.s32.totalorder %s657_s14, 0  ;;  %p55_p3 = scmp.ne.s32.totalorder %s641_s10, %s637_s9 }
   0xc   : > { %s927_s17 = smov (%p35_p0, %s33_s17), 0  ;;  %p56_p5 = scmp.eq.s32.totalorder %s419_s15, 0 }
   0xd   : > { %p719_p4 = por %p50_p2, %p49_p1  ;;  %s39_s20 = ssub.s32 %s653_s13, %s927_s17 }
   0xe   : > { %p107_p6 = scmp.eq.s32.totalorder %s419_s15, 1  ;;  %p40_p7 = scmp.eq.s32.totalorder %s39_s20, 0 }
   0xf   : > { %p725_p8 = por %p56_p5, %p55_p3  ;;  %p113_p10 = scmp.eq.s32.totalorder %s420_s16, 1 }
  0x10   : > { %p729_p9 = por %p107_p6, %p49_p1  ;;  %p458_p13 = scmp.lt.s32.totalorder %s657_s14, 2 }
  0x11   : > { %s909_s21 = scalar_select %p725_p8, 1, 0 }
  0x12   : > { %s910_s22 = scalar_select %p729_p9, 1, 0 }
  0x13   : > { %s734_s23 = scalar_select %p40_p7, %s645_s11, %s42_s18  }
  0x14   : > { %p736_p11 = por %p113_p10, %p55_p3  ;;  %s743_s25 = sand.u32 1, %s645_s11  }
  0x15   : > { %s423_s26 = sshll.u32 %s743_s25, 3  ;;  %s424_s27 = sshll.u32 %s653_s13, 7 }
  0x16   : > { %s911_s24 = scalar_select %p736_p11, 1, 0 }
  0x17   : > { %s752_s30 = scalar_lea.hbm %s903_s0, %s424_s27  ;;  %s137_s3 = scalar_lea.vmem [#allocation5], %s423_s26 }
  0x18   : > { %s145_s4 = sshll.u32 %s137_s3, 4  ;;  %p760_p0 = pnand %p458_p13, %p719_p4  ;;  %s756_s4 = int_to_ptr.vmem [resolvable:$true] %s145_s4 }
  0x19   : > { %s134_s6 = scalar_lea.sflag [#allocation6], %s743_s25  ;;  %s511_s7 = scalar_lea.hbm %s752_s30, 128 }
  0x1a   : > { %p512_p3 = scmp.ne.s32.totalorder %s752_s30, %s511_s7  ;;  %p513_p5 = pneg %p760_p0 }
  0x1b   : > { %s516_s16 = scalar_lea.hbm %s903_s0, 256  ;;  %p517_p4 = scmp.lt.u32.totalorder %s752_s30, %s903_s0 }
  0x1c   : > { %p514_p6 = pnand %p513_p5, %p512_p3  ;;  %p518_p10 = scmp.lt.u32.totalorder %s516_s16, %s511_s7 }
  0x1d   : > { %p520_p12 = scmp.lt.u32.totalorder %s511_s7, %s752_s30 }
  0x1e   : > { %p515_p7 = pneg %p514_p6  ;;  %p519_p13 = por %p518_p10, %p517_p4 }
  0x20   : > { %p521_p1 = por %p520_p12, %p519_p13 }
  0x22   : > { %p522_p2 = pnand %p521_p1, %p515_p7 }
  0x24   : > { %525 = shalt.err (!%p522_p2)
}
  0x25   : > { %s526_s20 = scalar_lea.vmem %s756_s4, 128  ;;  %s659_s28 = smov [#allocation5]  }
  0x26   : > { %p527_p3 = scmp.ne.s32.totalorder %s756_s4, %s526_s20  ;;  %s531_s29 = sshll.u32 %s659_s28, 4  ;;  %s532_s29 = int_to_ptr.vmem [resolvable:$false] %s531_s29 }
  0x27   : > { %s533_s3 = scalar_lea.vmem %s532_s29, 256  ;;  %p534_p9 = scmp.lt.s32.totalorder %s756_s4, %s532_s29 }
  0x28   : > { %p529_p6 = pnand %p527_p3, %p513_p5  ;;  %p535_p4 = scmp.lt.s32.totalorder %s533_s3, %s526_s20 }
  0x2a   : > { %p530_p11 = pneg %p529_p6  ;;  %p536_p10 = por %p535_p4, %p534_p9 }
  0x2c   : > { %p537_p12 = pnand %p536_p10, %p530_p11 }
  0x2e   : > { %540 = shalt.err (!%p537_p12)
}
  0x2f   : > { %450 = dma.hbm_to_vmem [thread:$0]  (!%p760_p0), %s752_s30, 128, %s756_s4, %s134_s6  }
  0x30   : > { %p913_p1 = scmp.lt.s32.totalorder %s657_s14, 3  ;;  %p914_p2 = scmp.ge.s32.totalorder %s657_s14, 1 }
  0x31   : > { %s805_s16 = scalar_lea.hbm %s904_s1, %s424_s27  ;;  %s156_s18 = scalar_lea.vmem [#allocation8], %s423_s26 }
  0x32   : > { %p796_p7 = pnand %p914_p2, %p913_p1  ;;  %s164_s19 = sshll.u32 %s156_s18, 4  ;;  %s165_s19 = int_to_ptr.vmem [resolvable:$true] %s164_s19 }
  0x33   : > { %s153_s30 = scalar_lea.sflag [#allocation9], %s743_s25  ;;  %s541_s4 = scalar_lea.hbm %s805_s16, 128 }
  0x34   : > { %s915_s7 = scalar_select %p796_p7, 1, 0 }
  0x35   : > { %p542_p9 = scmp.ne.s32.totalorder %s805_s16, %s541_s4  ;;  %s546_s27 = scalar_lea.hbm %s904_s1, 256 }
  0x36   : > { %p547_p3 = scmp.lt.u32.totalorder %s805_s16, %s904_s1  ;;  %p548_p6 = scmp.lt.u32.totalorder %s546_s27, %s541_s4 }
  0x37   : > { %p544_p11 = pnand %p542_p9, %p513_p5  ;;  %p550_p10 = scmp.lt.u32.totalorder %s541_s4, %s805_s16 }
  0x38   : > { %p549_p4 = por %p548_p6, %p547_p3 }
  0x39   : > { %p545_p13 = pneg %p544_p11 }
  0x3a   : > { %p551_p12 = por %p550_p10, %p549_p4 }
  0x3c   : > { %p552_p1 = pnand %p551_p12, %p545_p13 }
  0x3e   : > { %555 = shalt.err (!%p552_p1)
}
  0x3f   : > { %s556_s25 = scalar_lea.vmem %s165_s19, 128  ;;  %s660_s26 = smov [#allocation8]  }
  0x40   : > { %p557_p2 = scmp.ne.s32.totalorder %s165_s19, %s556_s25  ;;  %s561_s3 = sshll.u32 %s660_s26, 4  ;;  %s562_s3 = int_to_ptr.vmem [resolvable:$false] %s561_s3 }
  0x41   : > { %s563_s8 = scalar_lea.vmem %s562_s3, 256  ;;  %p564_p8 = scmp.lt.s32.totalorder %s165_s19, %s562_s3 }
  0x42   : > { %p559_p9 = pnand %p557_p2, %p513_p5  ;;  %p565_p7 = scmp.lt.s32.totalorder %s563_s8, %s556_s25 }
  0x44   : > { %p560_p11 = pneg %p559_p9  ;;  %p566_p3 = por %p565_p7, %p564_p8 }
  0x46   : > { %p567_p6 = pnand %p566_p3, %p560_p11 }
  0x48   : > { %570 = shalt.err (!%p567_p6)
}
  0x49   : > { %453 = dma.hbm_to_vmem [thread:$0]  (!%p760_p0), %s805_s16, 128, %s165_s19, %s153_s30  }
  0x4a   : > { %p916_p13 = scmp.ne.s32.totalorder %s915_s7, 0 }
  0x4b   : > { %s832_s15 = sand.u32 (!%p916_p13), 1, %s641_s10   ;;  %p917_p8 = scmp.ne.s32.totalorder (!%p916_p13), %s909_s21, 0 }
  0x4c   : > { %173 = sbr.rel (%p916_p13) target bundleno = 334 (0x14e), region = 28  ;;  %s835_s18 = sshll.u32 (!%p916_p13), %s832_s15, 3 }
  0x4d   : > { %s176_s4 = scalar_lea.sflag (!%p916_p13), [#allocation6], %s832_s15  ;;  %s179_s6 = scalar_lea.vmem (!%p916_p13), [#allocation5], %s835_s18 }
  0x53   : > { %624 = dma.done.wait (%p917_p8), %s176_s4, 128  }
  0x54   : > { %626 = vsyncadd (%p917_p8), %s176_s4, 4294967168  ;;  %s185_s5 = scalar_lea.sflag [#allocation9], %s832_s15  ;;  %s188_s7 = scalar_lea.vmem [#allocation8], %s835_s18 }
  0x55   : > { %628 = dma.done.wait (%p917_p8), %s185_s5, 128  }
  0x56   : > { %630 = vsyncadd (%p917_p8), %s185_s5, 4294967168  ;;  %v224_v0 = vld [vmem:[%s188_s7] sm:$0xff]  ;;  %v223_v1 = vld [vmem:[%s179_s6] sm:$0xff]  ;;  %v661_v3 = vmov 0.0   ;;  %v284_v40 = vlaneseq  ;;  %s432_s19 = sshll.u32 %s649_s12, 7  ;;  %s213_s20 = scalar_lea.vmem [#allocation10], %s835_s18 }
  0x57   : > { %vm225_vm0 = vcmp.ge.f32.partialorder %v224_v0, 1.0  ;;  %v228_v2 = vsub.f32 1.0, %v223_v1  ;;  %v232_v6 = vsub.f32 1.0, %v224_v0  ;;  %v242_v9 = vmul.f32 %v223_v1, %v223_v1  ;;  %s316_s27 = sshll.u32 %s213_s20, 4  ;;  %s854_s25 = scalar_lea.hbm %s905_s2, %s432_s19  ;;  %s856_s27 = int_to_ptr.vmem [resolvable:$true] %s316_s27 }
  0x58   : > { %v226_v4 = vsel %vm225_vm0, 1.0, %v661_v3  ;;  %v285_v41 = vshrl.u32 %v284_v40, 7  ;;  %v287_v42 = vand.u32 127, %v284_v40  ;;  %s303_s12 = scalar_lea.sflag [#allocation7], %s832_s15  ;;  %s571_s26 = scalar_lea.vmem %s856_s27, 128 }
  0x59   : > { %275 = vadd.xlane.f32.xlu1 %v226_v4  ;;  %v229_v5 = vsel %vm225_vm0, %v223_v1, %v228_v2  ;;  %v233_v7 = vmul.f32 %v232_v6, %v232_v6  ;;  %v236_v8 = vmul.f32 %v228_v2, %v228_v2  ;;  %v227_v14 = vsub.f32 1.0, %v226_v4  ;;  %p572_p0 = scmp.ne.s32.totalorder %s856_s27, %s571_s26  ;;  %p918_p5 = scmp.ne.s32.totalorder %s910_s22, 0 }
  0x5a   : > { %509 = vlog2.f32 %v229_v5  ;;  %vm288_vm1 = vcmp.eq.s32.totalorder %v285_v41, 0  ;;  %vm293_vm2 = vcmp.eq.s32.totalorder %v287_v42, 2  ;;  %vm291_vm3 = vcmp.eq.s32.totalorder %v287_v42, 1  ;;  %s662_s3 = smov [#allocation10]  }
  0x5b   : > { %v234_v12 = vmul.f32 %v233_v7, %v233_v7  ;;  %vm289_vm4 = vcmp.eq.s32.totalorder %v287_v42, 0  ;;  %vm294_vm5 = vmand %vm288_vm1, %vm293_vm2  ;;  %p573_p7 = pnand %p572_p0, %p918_p5  ;;  %s575_s8 = sshll.u32 %s662_s3, 4  ;;  %s576_s8 = int_to_ptr.vmem [resolvable:$false] %s575_s8 }
  0x5c   : > { %vm292_vm6 = vmand %vm288_vm1, %vm291_vm3  ;;  %s577_s18 = scalar_lea.vmem %s576_s8, 256  ;;  %p578_p10 = scmp.lt.s32.totalorder %s856_s27, %s576_s8 }
  0x5d   : > { %vm290_vm7 = vmand %vm288_vm1, %vm289_vm4  ;;  %p574_p4 = pneg %p573_p7  ;;  %p579_p12 = scmp.lt.s32.totalorder %s577_s18, %s571_s26 }
  0x5f   : > { %p580_p1 = por %p579_p12, %p578_p10 }
  0x61   : > { %p581_p2 = pnand %p580_p1, %p574_p4 }
  0x64   : > { %v510_v10 = vpop.eup %509 }
  0x65   : > { %v231_v11 = vmul.f32 0.6931472, %v510_v10 }
  0x67   : > { %v237_v13 = vmul.f32 %v236_v8, %v231_v11  ;;  %v243_v15 = vmul.f32 %v242_v9, %v231_v11 }
  0x69   : > { %v238_v16 = vmul.f32 %v237_v13, %v226_v4  ;;  %v244_v17 = vmul.f32 %v243_v15, %v234_v12 }
  0x6b   : > { %255 = vadd.xlane.f32.xlu0 %v238_v16  ;;  %v245_v18 = vmul.f32 %v244_v17, %v227_v14 }
  0x6f   : > { %265 = vadd.xlane.f32.xlu0 %v245_v18 }
  0xe6   : > { %v276_v19 = vpop.xlane.xlu1 %275 }
  0xe7   : > { %v277_v20 = vrot.slane %v276_v19, 4 }
  0xe9   : > { %v278_v21 = vadd.f32 %v277_v20, %v276_v19 }
  0xeb   : > { %v279_v25 = vrot.slane %v278_v21, 2 }
  0xed   : > { %v280_v31 = vadd.f32 %v279_v25, %v278_v21 }
  0xef   : > { %v281_v36 = vrot.slane %v280_v31, 1 }
  0xf1   : > { %v282_v39 = vadd.f32 %v281_v36, %v280_v31 }
  0xf8   : > { %v256_v22 = vpop.xlane.xlu0 %255 }
  0xf9   : > { %v257_v23 = vrot.slane %v256_v22, 4 }
  0xfb   : > { %v258_v24 = vadd.f32 %v257_v23, %v256_v22 }
  0xfc   : > { %v266_v26 = vpop.xlane.xlu0 %265 }
  0xfd   : > { %v259_v27 = vrot.slane %v258_v24, 2  ;;  %v267_v28 = vrot.slane %v266_v26, 4 }
  0xff   : > { %v268_v29 = vadd.f32 %v267_v28, %v266_v26  ;;  %v260_v30 = vadd.f32 %v259_v27, %v258_v24 }
 0x101   : > { %v269_v32 = vrot.slane %v268_v29, 2  ;;  %v261_v33 = vrot.slane %v260_v30, 1 }
 0x103   : > { %v270_v34 = vadd.f32 %v269_v32, %v268_v29  ;;  %v262_v35 = vadd.f32 %v261_v33, %v260_v30 }
 0x105   : > { %435 = vpush %v262_v35  ;;  %v271_v37 = vrot.slane %v270_v34, 1 }
 0x107   : > { %v272_v38 = vadd.f32 %v271_v37, %v270_v34 }
 0x109   : > { %437 = vpush %v272_v38 }
 0x10a   : > { %439 = vpush %v282_v39 }
 0x136   : > { %s436_s21 = spop %435 }
 0x137   : > { %v299_v46 = vstv %s436_s21 }
 0x13a   : > { %s438_s16 = spop %437 }
 0x13b   : > { %v297_v43 = vstv %s438_s16  ;;  %s440_s30 = spop %439 }
 0x13c   : > { %v295_v44 = vstv %s440_s30 }
 0x13d   : > { %v296_v45 = vsel %vm294_vm5, %v295_v44, 0.0 }
 0x13e   : > { %v298_v47 = vsel %vm292_vm6, %v297_v43, %v296_v45 }
 0x13f   : > { %v300_v48 = vsel %vm290_vm7, %v299_v46, %v298_v47 }
 0x140   : > { %301 = vst [vmem:[%s213_s20] sm:$0xff] %v300_v48 }
 0x141   : > { %584 = shalt.err (!%p581_p2)
}
 0x142   : > { %s585_s15 = scalar_lea.hbm %s854_s25, 128  ;;  %s589_s5 = scalar_lea.hbm %s905_s2, 256 }
 0x143   : > { %p586_p9 = scmp.ne.s32.totalorder %s854_s25, %s585_s15  ;;  %p590_p6 = scmp.lt.u32.totalorder %s854_s25, %s905_s2 }
 0x144   : > { %p591_p13 = scmp.lt.u32.totalorder %s589_s5, %s585_s15  ;;  %p593_p0 = scmp.lt.u32.totalorder %s585_s15, %s854_s25 }
 0x145   : > { %p587_p11 = pnand %p586_p9, %p918_p5 }
 0x146   : > { %p592_p8 = por %p591_p13, %p590_p6 }
 0x147   : > { %p588_p3 = pneg %p587_p11 }
 0x148   : > { %p594_p7 = por %p593_p0, %p592_p8 }
 0x14a   : > { %p595_p4 = pnand %p594_p7, %p588_p3 }
 0x14c   : > { %598 = shalt.err (!%p595_p4)
}
 0x14d   : > { %445 = dma.vmem_to_hbm [thread:$0]  (%p918_p5), %s856_s27, 128, %s854_s25, %s303_s12  }
 0x14e PF: > { %s328_s16 = sand.u32 1, %s637_s9   ;;  %p919_p10 = scmp.ne.s32.totalorder %s911_s24, 0 }
 0x14f   : > { %p920_p12 = scmp.ge.s32.totalorder %s657_s14, 2  ;;  %s329_s19 = scalar_lea.sflag [#allocation7], %s328_s16 }
 0x151   : > { %p455_p1 = pnand %p920_p12, %p919_p10 }
 0x153   : > { %632 = dma.done.wait (!%p455_p1), %s329_s19, 128  }
 0x154   : > { %634 = vsyncadd (!%p455_p1), %s329_s19, 4294967168  ;;  %s21_s14 = sadd.s32 1, %s657_s14   ;;  %s921_s9 = smov %s641_s10 }
 0x155   : > { %p18_p2 = scmp.ge.s32.totalorder %s21_s14, 4   ;;  %s922_s10 = smov %s645_s11 }
 0x156   : > { %s923_s11 = smov %s734_s23  ;;  %s924_s12 = smov %s653_s13 }
 0x157   : > { %s925_s13 = smov %s927_s17  ;;  %20 = sbr.rel (!%p18_p2) target bundleno = 8 (0x8), region = 94 }
 0x15e   :  { %334 = vsyncpa [#allocation6], 1 }
 0x15f   :  { %336 = vsyncpa [#allocation6 + $0x1], 1 }
 0x160   :  { %337 = vsyncpa [#allocation9], 1 }
 0x161   :  { %339 = vsyncpa [#allocation9 + $0x1], 1 }
 0x162   :  { %340 = vsyncpa [#allocation7], 1 }
 0x163   :  { %342 = vsyncpa [#allocation7 + $0x1], 1 }

</bundles_post_ra>
